<compile_context>
chip_gen: v7x
topology: tpu7x:2x2x1
jax: 0.10.0
libtpu: 0.0.40
codegen_flags: <defaults>
</compile_context>

<pallas_src>
import functools
import math

import numpy as np
import jax
import jax.numpy as jnp
from jax.experimental import pallas as pl
from jax.experimental.pallas import tpu as pltpu


def _fused_kernel(x_ref, w_ref, shift_ref, mask_ref, o_ref, *, k_max):
    # x_ref:     (B_blk, L, D)   batch block (f32, or bf16 on the MXU path)
    # w_ref:     (k_max*D, Fp)   all branches' conv weights * BN scale;
    #                            zero-padded taps and zero-padded lane columns
    # shift_ref: (1, Fp)         folded conv-bias + BN shift (0 in padded cols)
    # mask_ref:  (L, Fp)         1.0 where conv position t is valid for the branch
    #                            owning column f, else 0.0 (host constant)
    # o_ref:     (B_blk, Fp)     pooled outputs, sublane/lane-dense
    Bb, L, D = x_ref.shape
    Fp = w_ref.shape[-1]
    rows = Bb * L

    # ---- im2col via XLU sublane rolls on the flattened (Bb*L, D) slab: slot dk
    # holds rows shifted up by dk with wrap-around over the whole block.  Wrapped
    # rows (t + dk >= L) only multiply zero-padded weight taps (dk >= k_i) or land
    # on positions zeroed by mask_ref.  NOTE: the mask must stay AFTER the ReLU
    # and the pooling must stay max (0 is the neutral element once y >= 0).
    x2 = x_ref[...].reshape(rows, D).astype(jnp.float32)
    parts = [x2]
    for dk in range(1, k_max):
        # roll by rows - dk == shift every row up by dk (wrap-around).
        parts.append(pltpu.roll(x2, shift=rows - dk, axis=0))
    # TODO(synk): build the slab natively in bf16 once packed-sublane rotate is
    # verified on the target toolchain (halves the slab's VMEM footprint too).
    slab = jnp.concatenate(parts, axis=-1).astype(w_ref.dtype)   # (rows, k_max*D)

    # ---- one deep MXU contraction for every branch at once, f32 accumulation.
    acc = jnp.dot(slab, w_ref[...], preferred_element_type=jnp.float32)  # (rows, Fp)

    # ---- folded bias/BN shift + ReLU, hoisted validity mask, fused max pool.
    y = jnp.maximum(acc + shift_ref[...], 0.0).reshape(Bb, L, Fp)
    y = y * mask_ref[...]                                        # single VPU multiply
    o_ref[...] = jnp.max(y, axis=1)                              # (Bb, Fp) lane-dense


def convolution_layer_forward(x_nchw, packed, *, use_bf16=False, batch_block=None):
    """x_nchw: (B, 1, L, D) like PyTorch NCHW. Returns (B, 1, 1, sum(num_filters))."""
    x = x_nchw[:, 0, :, :]                                       # (B, L, D)
    B, L, D = x.shape
    ks = packed["ks"]
    k_max = max(ks)
    Ftot, Fp = packed["Ftot"], packed["Fp"]

    w = packed["w"]
    if use_bf16:
        # bf16 MXU path (v6e/v7x at realistic sizes): cast x at the boundary so
        # the HBM->VMEM DMA bytes are halved; accumulation/epilogue stay f32.
        w = w.astype(jnp.bfloat16)
        x = x.astype(jnp.bfloat16)

    if batch_block is None:
        # Single grid step by default: the grid is a serial loop on v5e/v6e, so
        # splitting a small batch only adds ~0.35us/step and shrinks the MXU M
        # (aim for batch_block*L >= 128/256).  Split into sublane-aligned halves
        # only when the per-step working set would blow ~24 MiB (v7x: 64 MiB/TC,
        # 32 MiB default scoped); the resulting blocks are marked "parallel" so
        # v7x's two TensorCores each take a share.
        batch_block = B
        bytes_per_row = L * (k_max * D * 4 + Fp * 4 + 2 * D * x.dtype.itemsize)
        while batch_block % 16 == 0 and batch_block * bytes_per_row > (24 << 20):
            batch_block //= 2
    n_blocks = pl.cdiv(B, batch_block)

    out = pl.pallas_call(
        functools.partial(_fused_kernel, k_max=k_max),
        out_shape=jax.ShapeDtypeStruct((B, Fp), jnp.float32),
        grid_spec=pltpu.PrefetchScalarGridSpec(
            num_scalar_prefetch=0,
            grid=(n_blocks,),
            in_specs=[
                pl.BlockSpec((batch_block, L, D), lambda i: (i, 0, 0)),  # x block
                pl.BlockSpec((k_max * D, Fp), lambda i: (0, 0)),         # fused W*scale
                pl.BlockSpec((1, Fp), lambda i: (0, 0)),                 # folded shift
                pl.BlockSpec((L, Fp), lambda i: (0, 0)),                 # validity mask
            ],
            out_specs=pl.BlockSpec((batch_block, Fp), lambda i: (i, 0)),
        ),
        compiler_params=pltpu.CompilerParams(
            dimension_semantics=("parallel",)),
    )(x, w, packed["shift"], packed["mask"])

    # Drop the lane padding; reshape == permute(0,2,3,1) + cat(dim=3).
    return out[:, :Ftot].reshape(B, 1, 1, Ftot)


def make_params(key, kernel_sizes, num_filters, embed_dim):
    """Per-branch params matching the module's __init__ (kaiming_uniform_ conv
    weight, zero conv bias); BatchNorm stats randomized to exercise the folding."""
    params = []
    for k, F in zip(kernel_sizes, num_filters):
        key, k1, k2, k3, k4, k5 = jax.random.split(key, 6)
        fan_in = 1 * k * embed_dim
        bound = math.sqrt(6.0 / fan_in)
        w = jax.random.uniform(k1, (k, embed_dim, F), jnp.float32,
                               minval=-bound, maxval=bound)      # (k, D, F)
        params.append(dict(
            k=k,
            w_kdf=w,
            bias=jnp.zeros((F,), jnp.float32),
            # TODO(synk): BatchNorm2d is reproduced in eval mode (running stats);
            # training-mode batch statistics are not computed inside the kernel.
            gamma=jax.random.uniform(k2, (F,), jnp.float32, 0.5, 1.5),
            beta=0.1 * jax.random.normal(k3, (F,), jnp.float32),
            mean=0.1 * jax.random.normal(k4, (F,), jnp.float32),
            var=jax.random.uniform(k5, (F,), jnp.float32, 0.5, 1.5),
        ))
    return params


def pack_params(branch_params, embed_dim, max_len, eps=1e-5, lane_width=128):
    """Fuse all branches: BN scale folded into the weights, conv bias folded into
    the BN shift, taps zero-padded to k_max, filter axis zero-padded to a multiple
    of 128 lanes, plus a host-constant validity mask."""
    ks = tuple(int(p["k"]) for p in branch_params)
    fs = tuple(int(p["w_kdf"].shape[-1]) for p in branch_params)
    k_max = max(ks)
    Ftot = sum(fs)
    Fp = ((Ftot + lane_width - 1) // lane_width) * lane_width

    w_cols, shifts = [], []
    for p in branch_params:
        k, w = p["k"], p["w_kdf"]                                # (k, D, F)
        F = w.shape[-1]
        w2 = w.reshape(k * embed_dim, F)
        if k < k_max:                                            # zero-pad unused taps
            w2 = jnp.concatenate(
                [w2, jnp.zeros(((k_max - k) * embed_dim, F), w2.dtype)], axis=0)
        scale = p["gamma"] / jnp.sqrt(p["var"] + eps)
        w2 = w2 * scale[None, :]                                 # (xW)*s == x(W*s)
        shift = (p["bias"] - p["mean"]) * scale + p["beta"]      # conv bias folded in
        w_cols.append(w2)
        shifts.append(shift)

    w = jnp.concatenate(w_cols, axis=-1)                         # (k_max*D, Ftot)
    shift = jnp.concatenate(shifts)                              # (Ftot,)
    if Fp > Ftot:
        # Padded columns get zero weights AND zero shift so they ReLU/max to 0
        # and are sliced off in the wrapper.
        w = jnp.pad(w, ((0, 0), (0, Fp - Ftot)))
        shift = jnp.pad(shift, (0, Fp - Ftot))

    # Grid-invariant validity mask (host constant): position t is valid for
    # branch i iff t < max_len - k_i + 1; padded columns are fully masked.
    mask = np.zeros((max_len, Fp), np.float32)
    off = 0
    for k_i, F_i in zip(ks, fs):
        mask[: max_len - k_i + 1, off: off + F_i] = 1.0
        off += F_i

    return dict(w=w, shift=shift[None, :], mask=jnp.asarray(mask),
                ks=ks, fs=fs, Ftot=Ftot, Fp=Fp)


def reference_forward(x_nchw, branch_params, eps=1e-5):
    """Pure-JAX reference (unfused, unfolded) for correctness checking."""
    x = x_nchw[:, 0, :, :]
    B, L, D = x.shape
    outs = []
    for p in branch_params:
        k, w, b = p["k"], p["w_kdf"], p["bias"]
        T = L - k + 1
        F = w.shape[-1]
        s = jnp.zeros((B, T, F), jnp.float32)
        for dk in range(k):
            s = s + jnp.einsum("bld,df->blf", x[:, dk:dk + T, :], w[dk])
        s = s + b[None, None, :]
        scale = p["gamma"] / jnp.sqrt(p["var"] + eps)
        y = (s - p["mean"]) * scale + p["beta"]
        y = jnp.maximum(y, 0.0)
        outs.append(jnp.max(y, axis=1))                          # (B, F)
    out = jnp.concatenate(outs, axis=-1)
    return out.reshape(out.shape[0], 1, 1, out.shape[1])


if __name__ == "__main__":
    # Small shapes consistent with the module:
    #   args.fixed_max_len = 16, args.decoder_embed_dim = 32
    #   kernel_sizes = [2, 3, 4], num_filters = [8, 8, 16]
    B, L, D = 2, 16, 32
    kernel_sizes = [2, 3, 4]
    num_filters = [8, 8, 16]

    key = jax.random.PRNGKey(0)
    key_x, key_p = jax.random.split(key)
    x = jax.random.normal(key_x, (B, 1, L, D), jnp.float32)      # NCHW input
    branch_params = make_params(key_p, kernel_sizes, num_filters, D)
    packed = pack_params(branch_params, D, L)

    ref = reference_forward(x, branch_params)

    # f32 path (near-exact vs. reference; only BN-scale folding reorders ops).
    out = jax.block_until_ready(convolution_layer_forward(x, packed))
    assert out.shape == (B, 1, 1, sum(num_filters)), out.shape
    assert jnp.allclose(out, ref, atol=1e-4, rtol=1e-4), "f32 mismatch vs reference"

    # bf16 MXU path (v6e/v7x default at realistic sizes); looser tolerance.
    out_bf16 = jax.block_until_ready(
        convolution_layer_forward(x, packed, use_bf16=True))
    assert out_bf16.shape == (B, 1, 1, sum(num_filters)), out_bf16.shape
    assert jnp.allclose(out_bf16, ref, atol=5e-2, rtol=5e-2), "bf16 mismatch"

    print("KERNEL_OK")
</pallas_src>

<mosaic_0001>
module attributes {stable_mosaic.version = 11 : i64} {
  func.func @_fused_kernel(%arg0: i32, %arg1: memref<2x16x32xf32, #tpu.memory_space<vmem>>, %arg2: memref<128x128xf32, #tpu.memory_space<vmem>>, %arg3: memref<1x128xf32, #tpu.memory_space<vmem>>, %arg4: memref<16x128xf32, #tpu.memory_space<vmem>>, %arg5: memref<2x128xf32, #tpu.memory_space<vmem>>) attributes {dimension_semantics = [#tpu.dimension_semantics<parallel>], iteration_bounds = array<i64: 1>, scalar_prefetch = 0 : i64, scratch_operands = 0 : i64, tpu.core_type = #tpu.core_type<tc>, window_params = [{transform_indices = @transform_0, window_bounds = array<i64: 2, 16, 32>}, {pipeline_mode = #tpu.pipeline_mode<synchronous>, transform_indices = @transform_1, window_bounds = array<i64: 128, 128>}, {pipeline_mode = #tpu.pipeline_mode<synchronous>, transform_indices = @transform_2, window_bounds = array<i64: 1, 128>}, {pipeline_mode = #tpu.pipeline_mode<synchronous>, transform_indices = @transform_3, window_bounds = array<i64: 16, 128>}, {transform_indices = @transform_4, window_bounds = array<i64: 2, 128>}]} {
    %c0 = arith.constant 0 : index
    %c0_0 = arith.constant 0 : index
    %c0_1 = arith.constant 0 : index
    %0 = vector.load %arg1[%c0, %c0_0, %c0_1] : memref<2x16x32xf32, #tpu.memory_space<vmem>>, vector<2x16x32xf32>
    %1 = vector.shape_cast %0 : vector<2x16x32xf32> to vector<32x32xf32>
    %c31_i32 = arith.constant 31 : i32
    %2 = tpu.dynamic_rotate %1 by %c31_i32 dim 0 : vector<32x32xf32>, i32 -> vector<32x32xf32>
    %c30_i32 = arith.constant 30 : i32
    %3 = tpu.dynamic_rotate %1 by %c30_i32 dim 0 : vector<32x32xf32>, i32 -> vector<32x32xf32>
    %c29_i32 = arith.constant 29 : i32
    %4 = tpu.dynamic_rotate %1 by %c29_i32 dim 0 : vector<32x32xf32>, i32 -> vector<32x32xf32>
    %5 = tpu.concatenate %1, %2, %3, %4 in 1 : vector<32x32xf32>, vector<32x32xf32>, vector<32x32xf32>, vector<32x32xf32> -> vector<32x128xf32>
    %c0_2 = arith.constant 0 : index
    %c0_3 = arith.constant 0 : index
    %6 = vector.load %arg2[%c0_2, %c0_3] : memref<128x128xf32, #tpu.memory_space<vmem>>, vector<128x128xf32>
    %cst = arith.constant dense<0.000000e+00> : vector<32x128xf32>
    %7 = tpu.matmul %5, %6, %cst {dimension_numbers = #tpu.dot_dimension_numbers<[1], [0], [0], [1], [0, 0, 1, 1], [], []>} : vector<32x128xf32>, vector<128x128xf32>, vector<32x128xf32> -> vector<32x128xf32>
    %c0_4 = arith.constant 0 : index
    %c0_5 = arith.constant 0 : index
    %8 = vector.load %arg3[%c0_4, %c0_5] : memref<1x128xf32, #tpu.memory_space<vmem>>, vector<1x128xf32>
    %9 = vector.broadcast %8 : vector<1x128xf32> to vector<32x128xf32>
    %10 = arith.addf %7, %9 : vector<32x128xf32>
    %cst_6 = arith.constant 0.000000e+00 : f32
    %11 = vector.broadcast %cst_6 : f32 to vector<32x128xf32>
    %12 = arith.maximumf %10, %11 : vector<32x128xf32>
    %13 = vector.shape_cast %12 : vector<32x128xf32> to vector<2x16x128xf32>
    %c0_7 = arith.constant 0 : index
    %c0_8 = arith.constant 0 : index
    %14 = vector.load %arg4[%c0_7, %c0_8] : memref<16x128xf32, #tpu.memory_space<vmem>>, vector<16x128xf32>
    %15 = vector.shape_cast %14 : vector<16x128xf32> to vector<1x16x128xf32>
    %16 = vector.broadcast %15 : vector<1x16x128xf32> to vector<2x16x128xf32>
    %17 = arith.mulf %13, %16 : vector<2x16x128xf32>
    %cst_9 = arith.constant dense<0xFF800000> : vector<2x128xf32>
    %18 = vector.multi_reduction <maximumf>, %17, %cst_9 [1] : vector<2x16x128xf32> to vector<2x128xf32>
    %c0_10 = arith.constant 0 : index
    %c0_11 = arith.constant 0 : index
    %19 = vector.load %arg5[%c0_10, %c0_11] : memref<2x128xf32, #tpu.memory_space<vmem>>, vector<2x128xf32>
    tpu.vector_store %arg5[%c0_10, %c0_11], %18 {strides = array<i32>} : memref<2x128xf32, #tpu.memory_space<vmem>>, vector<2x128xf32>,
    return
  }
  func.func @transform_0(%arg0: i32) -> (i32, i32, i32) {
    %c0_i32 = arith.constant 0 : i32
    %c0_i32_0 = arith.constant 0 : i32
    %c0_i32_1 = arith.constant 0 : i32
    return %arg0, %c0_i32, %c0_i32_0 : i32, i32, i32
  }
  func.func @transform_1(%arg0: i32) -> (i32, i32) {
    %c0_i32 = arith.constant 0 : i32
    %c0_i32_0 = arith.constant 0 : i32
    %c0_i32_1 = arith.constant 0 : i32
    return %c0_i32, %c0_i32_0 : i32, i32
  }
  func.func @transform_2(%arg0: i32) -> (i32, i32) {
    %c0_i32 = arith.constant 0 : i32
    %c0_i32_0 = arith.constant 0 : i32
    %c0_i32_1 = arith.constant 0 : i32
    return %c0_i32, %c0_i32_0 : i32, i32
  }
  func.func @transform_3(%arg0: i32) -> (i32, i32) {
    %c0_i32 = arith.constant 0 : i32
    %c0_i32_0 = arith.constant 0 : i32
    %c0_i32_1 = arith.constant 0 : i32
    return %c0_i32, %c0_i32_0 : i32, i32
  }
  func.func @transform_4(%arg0: i32) -> (i32, i32) {
    %c0_i32 = arith.constant 0 : i32
    %c0_i32_0 = arith.constant 0 : i32
    return %arg0, %c0_i32 : i32, i32
  }
}

</mosaic_0001>

<bundles_post_ra>
// kernel: tpu_custom_call.1
= control target key start
LH: loop header
LB: loop body
LE: loop exit
PB: predicated region body
PF: predicated region fallthrough
CT: control target
= control target key end

     0   :  { %9 = vsyncpa [#allocation3], 0  ;;  %s690_s0 = inlined_call_operand.hbm [shape: f32[2,16,32], index: 0, kind: input, shape index: {}]   ;;  %s691_s1 = inlined_call_operand.hbm [shape: f32[128,128], index: 1, kind: input, shape index: {}]   ;;  %s692_s2 = inlined_call_operand.vmem [shape: f32[1,128], index: 2, kind: input, shape index: {}]   ;;  %s693_s3 = inlined_call_operand.hbm [shape: f32[16,128], index: 3, kind: input, shape index: {}]   ;;  %s694_s4 = inlined_call_operand.hbm [shape: f32[2,128], index: 4, kind: output, shape index: {}]  }
   0x1   :  { %10 = vsyncpa [#allocation6], 0 }
   0x2   :  { %11 = vsyncpa [#allocation4], 0  ;;  %s549_s15 = smov [#allocation5]   ;;  %s550_s17 = smov [#allocation2]  }
   0x3   :  { %s29_s16 = sshll.u32 %s549_s15, 4  ;;  %s17_s18 = sshll.u32 %s550_s17, 4  ;;  %s30_s16 = int_to_ptr.vmem [resolvable:$true] %s29_s16  ;;  %s583_s18 = int_to_ptr.vmem [resolvable:$true] %s17_s18 }
   0x4   :  { %s455_s21 = scalar_lea.hbm %s691_s1, 2048 }
   0x5   :  { %p456_p0 = scmp.ne.s32.totalorder %s691_s1, %s455_s21  ;;  %p459_p1 = scmp.lt.u32.totalorder %s455_s21, %s691_s1 }
   0x7   :  { %p461_p2 = pnand %p459_p1, %p456_p0 }
   0x9   :  { %464 = shalt.err (!%p461_p2)
}
   0xa   :  { %s465_s26 = scalar_lea.vmem %s30_s16, 2048  ;;  %p470_p4 = scmp.lt.s32.totalorder %s30_s16, %s30_s16 }
   0xb   :  { %p466_p3 = scmp.ne.s32.totalorder %s30_s16, %s465_s26  ;;  %p471_p5 = scmp.lt.s32.totalorder %s465_s26, %s465_s26 }
   0xd   :  { %p472_p6 = por %p471_p5, %p470_p4 }
   0xf   :  { %p473_p7 = pnand %p472_p6, %p466_p3 }
  0x11   :  { %476 = shalt.err (!%p473_p7)
}
  0x12   :  { %s551_s27 = smov 128   ;;  %s552_s28 = smov 8  }
  0x13   :  { %35 = dma.hbm_to_vmem [thread:$0]  %s691_s1, 2048, %s30_s16, [#allocation6], %s551_s27, %s551_s27, %s552_s28  }
  0x14   :  { %s477_s7 = scalar_lea.hbm %s690_s0, 512 }
  0x15   :  { %p478_p8 = scmp.ne.s32.totalorder %s690_s0, %s477_s7  ;;  %p481_p9 = scmp.lt.u32.totalorder %s477_s7, %s690_s0 }
  0x17   :  { %p483_p10 = pnand %p481_p9, %p478_p8 }
  0x19   :  { %486 = shalt.err (!%p483_p10)
}
  0x1a   :  { %s487_s12 = scalar_lea.vmem %s583_s18, 512  ;;  %p492_p12 = scmp.lt.s32.totalorder %s583_s18, %s583_s18 }
  0x1b   :  { %p488_p11 = scmp.ne.s32.totalorder %s583_s18, %s487_s12  ;;  %p493_p13 = scmp.lt.s32.totalorder %s487_s12, %s487_s12 }
  0x1d   :  { %p494_p0 = por %p493_p13, %p492_p12 }
  0x1f   :  { %p495_p1 = pnand %p494_p0, %p488_p11 }
  0x21   :  { %498 = shalt.err (!%p495_p1)
}
  0x22   :  { %23 = dma.hbm_to_vmem [thread:$0]  %s690_s0, 512, %s583_s18, [#allocation3], %s551_s27, %s551_s27, %s552_s28  }
  0x23   :  { %s553_s14 = smov [#allocation7]   ;;  %s499_s19 = scalar_lea.hbm %s693_s3, 256 }
  0x24   :  { %s43_s15 = sshll.u32 %s553_s14, 4  ;;  %p500_p2 = scmp.ne.s32.totalorder %s693_s3, %s499_s19  ;;  %s44_s15 = int_to_ptr.vmem [resolvable:$true] %s43_s15 }
  0x25   :  { %p503_p3 = scmp.lt.u32.totalorder %s499_s19, %s693_s3 }
  0x27   :  { %p505_p4 = pnand %p503_p3, %p500_p2 }
  0x29   :  { %508 = shalt.err (!%p505_p4)
}
  0x2a   :  { %s509_s24 = scalar_lea.vmem %s44_s15, 256  ;;  %p514_p6 = scmp.lt.s32.totalorder %s44_s15, %s44_s15 }
  0x2b   :  { %p510_p5 = scmp.ne.s32.totalorder %s44_s15, %s509_s24  ;;  %p515_p7 = scmp.lt.s32.totalorder %s509_s24, %s509_s24 }
  0x2d   :  { %p516_p8 = por %p515_p7, %p514_p6 }
  0x2f   :  { %p517_p9 = pnand %p516_p8, %p510_p5 }
  0x31   :  { %520 = shalt.err (!%p517_p9)
}
  0x32   :  { %49 = dma.hbm_to_vmem [thread:$0]  %s693_s3, 256, %s44_s15, [#allocation6], %s551_s27, %s551_s27, %s552_s28  }
  0x33   :  { %543 = dma.done.wait [#allocation3], 512  }
  0x34   :  { %544 = vsyncadd [#allocation3], 4294966784 }
  0x35   :  { %545 = dma.done.wait [#allocation6], 2304  }
  0x36   :  { %546 = vsyncadd [#allocation6], 4294964992  ;;  %v67_v0 = vlaneseq  ;;  %v635_v2 = vld [vmem:[#allocation2] sm:$0xff]  ;;  %v637_v3 = vld [vmem:[#allocation2 + $0x8] sm:$0xff]  ;;  %s554_s3 = smov 64   ;;  %s555_s25 = smov 32  }
  0x37   :  { %v639_v4 = vld [vmem:[#allocation2 + $0x10] sm:$0xff]  ;;  %v641_v5 = vld [vmem:[#allocation2 + $0x18] sm:$0xff]  ;;  %v74_v6 = vrot.slane %v635_v2, 2  ;;  %v75_v7 = vrot.slane %v637_v3, 2  ;;  %v63_v9 = vrot.slane %v635_v2, 1  ;;  %v64_v11 = vrot.slane %v637_v3, 1 }
  0x38   :  { %v68_v1 = vshrl.u32 %v67_v0, 7  ;;  %v76_v8 = vrot.slane %v639_v4, 2  ;;  %v77_v10 = vrot.slane %v641_v5, 2  ;;  %v65_v12 = vrot.slane %v639_v4, 1  ;;  %v155_v22 = vld [vmem:[#allocation5] sm:$0xff]  ;;  %v156_v23 = vld [vmem:[#allocation5 + $0x8] sm:$0xff] }
  0x39   :  { %v66_v13 = vrot.slane %v641_v5, 1  ;;  %v83_v16 = vrot.slane %v635_v2, 3  ;;  %v84_v17 = vrot.slane %v637_v3, 3  ;;  %v157_v27 = vld [vmem:[#allocation5 + $0x10] sm:$0xff]  ;;  %v158_v28 = vld [vmem:[#allocation5 + $0x18] sm:$0xff]  ;;  %v85_v31 = vrot.slane %v639_v4, 3 }
  0x3a   :  { %vm78_vm0 = vcmp.lt.s32.totalorder %v68_v1, 6  ;;  %vm69_vm1 = vcmp.lt.s32.totalorder %v68_v1, 7  ;;  %vm87_vm2 = vcmp.lt.s32.totalorder %v68_v1, 5  ;;  %v86_v32 = vrot.slane %v641_v5, 3  ;;  %v159_v40 = vld [vmem:[#allocation5 + $0x20] sm:$0xff]  ;;  %v160_v41 = vld [vmem:[#allocation5 + $0x28] sm:$0xff] }
  0x3b   :  { %v81_v14 = vsel %vm78_vm0, %v74_v6, %v75_v7  ;;  %v80_v15 = vsel %vm78_vm0, %v75_v7, %v76_v8  ;;  %v79_v18 = vsel %vm78_vm0, %v76_v8, %v77_v10  ;;  %v70_v19 = vsel %vm69_vm1, %v65_v12, %v66_v13  ;;  %v161_v45 = vld [vmem:[#allocation5 + $0x30] sm:$0xff]  ;;  %v162_v46 = vld [vmem:[#allocation5 + $0x38] sm:$0xff]  ;;  %s556_s26 = smov 96   ;;  %v163_v48 = vld [vmem:[#allocation5 + $0x40] sm:$0xff] }
  0x3c   :  { %v72_v20 = vsel %vm69_vm1, %v63_v9, %v64_v11  ;;  %v82_v21 = vsel %vm78_vm0, %v77_v10, %v74_v6  ;;  %v435_v24 = vpack.i.bf16 %v79_v18, %v81_v14  ;;  %v71_v26 = vsel %vm69_vm1, %v64_v11, %v65_v12  ;;  %v164_v49 = vld [vmem:[#allocation5 + $0x48] sm:$0xff]  ;;  %v165_v51 = vld [vmem:[#allocation5 + $0x50] sm:$0xff]  ;;  %v166_v52 = vld [vmem:[#allocation5 + $0x58] sm:$0xff] }
  0x3d   :  { %v425_v25 = vpack.i.bf16 %v70_v19, %v72_v20  ;;  %v440_v29 = vpack.i.bf16 %v82_v21, %v80_v15  ;;  %v73_v30 = vsel %vm69_vm1, %v66_v13, %v63_v9  ;;  %v90_v34 = vsel %vm87_vm2, %v83_v16, %v84_v17  ;;  %v167_v54 = vld [vmem:[#allocation5 + $0x60] sm:$0xff]  ;;  %v168_v55 = vld [vmem:[#allocation5 + $0x68] sm:$0xff]  ;;  %v169_v57 = vld [vmem:[#allocation5 + $0x70] sm:$0xff] }
  0x3e   :  { %436 = vrot.lane.b32.xlu1 %v435_v24, %s554_s3  ;;  %v430_v33 = vpack.i.bf16 %v73_v30, %v71_v26  ;;  %v368_v35 = vpack.c.bf16 %v156_v23, %v155_v22  ;;  %v89_v36 = vsel %vm87_vm2, %v84_v17, %v85_v31  ;;  %v91_v37 = vsel %vm87_vm2, %v86_v32, %v83_v16  ;;  %v170_v58 = vld [vmem:[#allocation5 + $0x78] sm:$0xff] }
  0x3f   :  { %426 = vrot.lane.b32.xlu0 %v425_v25, %s555_s25  ;;  %v88_v38 = vsel %vm87_vm2, %v85_v31, %v86_v32  ;;  %v372_v39 = vpack.c.bf16 %v158_v28, %v157_v27  ;;  %v450_v42 = vpack.i.bf16 %v91_v37, %v89_v36  ;;  %v376_v44 = vpack.c.bf16 %v160_v41, %v159_v40 }
  0x40   :  { %369 = vmatprep.subr.bf16.mxu0 %v368_v35  ;;  %400 = vmatprep.subr.bf16.mxu1 %v368_v35  ;;  %v445_v43 = vpack.i.bf16 %v88_v38, %v90_v34  ;;  %v380_v47 = vpack.c.bf16 %v162_v46, %v161_v45  ;;  %v384_v50 = vpack.c.bf16 %v164_v49, %v163_v48  ;;  %vm140_vm3 = vcmask 261120   ;;  %v267_v38 = vld [vmem:[#allocation7] sm:$0xff] }
  0x41   :  { %371 = vmatpush3.bf16.msra.mxu0 %v368_v35  ;;  %408 = vmatpush3.bf16.msra.mxu1 %v368_v35  ;;  %v388_v53 = vpack.c.bf16 %v166_v52, %v165_v51  ;;  %v392_v56 = vpack.c.bf16 %v168_v55, %v167_v54  ;;  %v396_v59 = vpack.c.bf16 %v170_v58, %v169_v57  ;;  %vm145_vm4 = vcmask 523264  }
  0x42   :  { %441 = vrot.lane.b32.xlu1 %v440_v29, %s554_s3  ;;  %373 = vmatprep.subr.bf16.mxu0 %v372_v39  ;;  %vm150_vm5 = vcmask 785408   ;;  %vm289_vm6 = vcmask 1041409  }
  0x43   :  { %431 = vrot.lane.b32.xlu0 %v430_v33, %s555_s25  ;;  %401 = vmatprep.subr.bf16.mxu1 %v372_v39  ;;  %v268_v33 = vld [vmem:[#allocation7 + $0x8] sm:$0xff] }
  0x45   :  { %375 = vmatpush3.bf16.msra.mxu0 %v372_v39  ;;  %409 = vmatpush3.bf16.msra.mxu1 %v372_v39 }
  0x46   :  { %451 = vrot.lane.b32.xlu1 %v450_v42, %s556_s26  ;;  %377 = vmatprep.subr.bf16.mxu0 %v376_v44 }
  0x47   :  { %446 = vrot.lane.b32.xlu0 %v445_v43, %s556_s26  ;;  %402 = vmatprep.subr.bf16.mxu1 %v376_v44 }
  0x49   :  { %379 = vmatpush3.bf16.msra.mxu0 %v376_v44  ;;  %410 = vmatpush3.bf16.msra.mxu1 %v376_v44 }
  0x4a   :  { %381 = vmatprep.subr.bf16.mxu0 %v380_v47  ;;  %403 = vmatprep.subr.bf16.mxu1 %v380_v47 }
  0x4d   :  { %383 = vmatpush3.bf16.msra.mxu0 %v380_v47  ;;  %411 = vmatpush3.bf16.msra.mxu1 %v380_v47 }
  0x4e   :  { %385 = vmatprep.subr.bf16.mxu0 %v384_v50  ;;  %404 = vmatprep.subr.bf16.mxu1 %v384_v50 }
  0x51   :  { %387 = vmatpush3.bf16.msra.mxu0 %v384_v50  ;;  %412 = vmatpush3.bf16.msra.mxu1 %v384_v50 }
  0x52   :  { %389 = vmatprep.subr.bf16.mxu0 %v388_v53  ;;  %405 = vmatprep.subr.bf16.mxu1 %v388_v53 }
  0x55   :  { %391 = vmatpush3.bf16.msra.mxu0 %v388_v53  ;;  %413 = vmatpush3.bf16.msra.mxu1 %v388_v53 }
  0x56   :  { %393 = vmatprep.subr.bf16.mxu0 %v392_v56  ;;  %406 = vmatprep.subr.bf16.mxu1 %v392_v56 }
  0x59   :  { %395 = vmatpush3.bf16.msra.mxu0 %v392_v56  ;;  %414 = vmatpush3.bf16.msra.mxu1 %v392_v56 }
  0x5a   :  { %397 = vmatprep.subr.bf16.mxu0 %v396_v59  ;;  %407 = vmatprep.subr.bf16.mxu1 %v396_v59 }
  0x5d   :  { %399 = vmatpush3.bf16.msra.mxu0 %v396_v59  ;;  %415 = vmatpush3.bf16.msra.mxu1 %v396_v59 }
  0xb0   :  { %v437_v60 = vpop.permute.xlu1 %436 }
  0xb1   :  { %v427_v61 = vpop.permute.xlu0 %426  ;;  %v439_v8 = vunpack.i.h.bf16 %v437_v60  ;;  %v438_v9 = vunpack.i.l.bf16 %v437_v60 }
  0xb2   :  { %v429_v62 = vunpack.i.h.bf16 %v427_v61  ;;  %v428_v63 = vunpack.i.l.bf16 %v427_v61 }
  0xb4   :  { %v442_v0 = vpop.permute.xlu1 %441  ;;  %v141_v12 = vsel %vm140_vm3, %v635_v2, %v428_v63  ;;  %v143_v13 = vsel %vm140_vm3, %v639_v4, %v429_v62 }
  0xb5   :  { %v432_v1 = vpop.permute.xlu0 %431  ;;  %v444_v10 = vunpack.i.h.bf16 %v442_v0  ;;  %v443_v11 = vunpack.i.l.bf16 %v442_v0  ;;  %v146_v22 = vsel %vm145_vm4, %v141_v12, %v438_v9  ;;  %v148_v23 = vsel %vm145_vm4, %v143_v13, %v439_v8 }
  0xb6   :  { %v434_v6 = vunpack.i.h.bf16 %v432_v1  ;;  %v433_v7 = vunpack.i.l.bf16 %v432_v1 }
  0xb8   :  { %v142_v14 = vsel %vm140_vm3, %v637_v3, %v433_v7  ;;  %v144_v15 = vsel %vm140_vm3, %v641_v5, %v434_v6  ;;  %v452_v16 = vpop.permute.xlu1 %451  ;;  %v309_v5 = vld [vmem:[%s692_s2] ss:$0 sm:$0xff]  ;;  %s557_s2 = smov [#allocation8]  }
  0xb9   :  { %v447_v17 = vpop.permute.xlu0 %446  ;;  %v454_v18 = vunpack.i.h.bf16 %v452_v16  ;;  %v453_v19 = vunpack.i.l.bf16 %v452_v16  ;;  %v147_v24 = vsel %vm145_vm4, %v142_v14, %v443_v11  ;;  %v149_v2 = vsel %vm145_vm4, %v144_v15, %v444_v10  ;;  %s299_s29 = sshll.u32 %s557_s2, 4  ;;  %s300_s29 = int_to_ptr.vmem [resolvable:$true] %s299_s29 }
  0xba   :  { %v449_v20 = vunpack.i.h.bf16 %v447_v17  ;;  %v448_v21 = vunpack.i.l.bf16 %v447_v17  ;;  %s521_s30 = scalar_lea.vmem %s300_s29, 32  ;;  %p526_p11 = scmp.lt.s32.totalorder %s300_s29, %s300_s29 }
  0xbb   :  { %v152_v3 = vsel %vm150_vm5, %v147_v24, %v453_v19  ;;  %v154_v26 = vsel %vm150_vm5, %v149_v2, %v454_v18  ;;  %p522_p10 = scmp.ne.s32.totalorder %s300_s29, %s521_s30  ;;  %p527_p12 = scmp.lt.s32.totalorder %s521_s30, %s521_s30 }
  0xbc   :  { %v151_v4 = vsel %vm150_vm5, %v146_v22, %v448_v21  ;;  %v153_v25 = vsel %vm150_vm5, %v148_v23, %v449_v20 }
  0xbd   :  { %362 = vmatprep.mubr.f32.mxu0 %v151_v4  ;;  %365 = vmatprep.mubr.f32.mxu1 %v153_v25  ;;  %p528_p13 = por %p527_p12, %p526_p11 }
  0xbe   :  { %363 = vmatmul.mubr.f32.vlgmr.msra.gmra.mrb[0].mxu0 %v152_v3  ;;  %366 = vmatmul.mubr.f32.vlgmr.msra.gmra.mrb[0].mxu1 %v154_v26 }
  0xbf   :  { %p529_p0 = pnand %p528_p13, %p522_p10 }
 0x191   :  { %v364_v27 = vpop.f32.mrb[0].mxu0  ;;  %v367_v28 = vpop.f32.mrb[0].mxu1 }
 0x192   :  { %v250_v29 = vadd.f32 %v364_v27, %v309_v5  ;;  %v260_v30 = vadd.f32 %v367_v28, %v309_v5  ;;  %v244_v31 = vpop.f32.mrb[1].mxu0  ;;  %v254_v32 = vpop.f32.mrb[1].mxu1 }
 0x193   :  { %v245_v34 = vadd.f32 %v309_v5, %v244_v31  ;;  %v255_v35 = vadd.f32 %v309_v5, %v254_v32 }
 0x194   :  { %v264_v36 = vmax.f32 %v250_v29, 0.0  ;;  %v266_v37 = vmax.f32 %v260_v30, 0.0 }
 0x195   :  { %v263_v39 = vmax.f32 %v245_v34, 0.0  ;;  %v265_v40 = vmax.f32 %v255_v35, 0.0 }
 0x196   :  { %v270_v41 = vmul.f32 %v268_v33, %v264_v36  ;;  %v272_v42 = vmul.f32 %v268_v33, %v266_v37 }
 0x197   :  { %v269_v43 = vmul.f32 %v267_v38, %v263_v39  ;;  %v271_v44 = vmul.f32 %v267_v38, %v265_v40 }
 0x199   :  { %v273_v45 = vmax.f32 %v269_v43, %v270_v41  ;;  %v280_v46 = vmax.f32 %v271_v44, %v272_v42 }
 0x19b   :  { %v274_v47 = vrot.slane %v273_v45, 4  ;;  %v281_v48 = vrot.slane %v280_v46, 4 }
 0x19d   :  { %v275_v49 = vmax.f32 %v273_v45, %v274_v47  ;;  %v282_v50 = vmax.f32 %v280_v46, %v281_v48 }
 0x19f   :  { %v276_v51 = vrot.slane %v275_v49, 2  ;;  %v283_v52 = vrot.slane %v282_v50, 2 }
 0x1a1   :  { %v277_v53 = vmax.f32 %v275_v49, %v276_v51  ;;  %v284_v54 = vmax.f32 %v282_v50, %v283_v52 }
 0x1a3   :  { %v278_v55 = vrot.slane %v277_v53, 1  ;;  %v285_v56 = vrot.slane %v284_v54, 1 }
 0x1a5   :  { %v279_v57 = vmax.f32 %v277_v53, %v278_v55  ;;  %v286_v58 = vmax.f32 %v284_v54, %v285_v56 }
 0x1a7   :  { %v290_v59 = vsel %vm289_vm6, %v286_v58, %v279_v57 }
 0x1a8   :  { %292 = vst [vmem:[#allocation8] sm:$0x3] %v290_v59 }
 0x1a9   :  { %532 = shalt.err (!%p529_p0)
}
 0x1aa   :  { %s533_s7 = scalar_lea.hbm %s694_s4, 32 }
 0x1ab   :  { %p534_p1 = scmp.ne.s32.totalorder %s694_s4, %s533_s7  ;;  %p537_p2 = scmp.lt.u32.totalorder %s533_s7, %s694_s4 }
 0x1ad   :  { %p539_p3 = pnand %p537_p2, %p534_p1 }
 0x1af   :  { %542 = shalt.err (!%p539_p3)
}
 0x1b0   :  { %302 = dma.vmem_to_hbm [thread:$0]  %s300_s29, 32, %s694_s4, [#allocation4]  }
 0x1b1   :  { %547 = dma.done.wait [#allocation4], 32  }
 0x1b2   :  { %548 = vsyncadd [#allocation4], 4294967264 }
 0x1b3   :  { %306 = vsyncpa [#allocation3], 1 }
 0x1b4   :  { %307 = vsyncpa [#allocation6], 1 }
 0x1b5   :  { %308 = vsyncpa [#allocation4], 1 }

</bundles_post_ra>
